<compile_context>
chip_gen: v6e
topology: v6e:2x2x1
jax: 0.10.0
libtpu: 0.0.40
codegen_flags: <defaults>
</compile_context>

<pallas_src>
import numpy as np

import jax
import jax.numpy as jnp
from jax.experimental import pallas as pl
from jax.experimental.pallas import tpu as pltpu


def _moving_avg_matrix(L: int, kernel_size: int) -> np.ndarray:
    """(L, L) float32 matrix s.t. A @ x == replicate-padded moving average."""
    pad = (kernel_size - 1) // 2
    t = np.arange(L)
    src = np.clip(t[:, None] + (np.arange(kernel_size)[None, :] - pad), 0, L - 1)
    A = np.zeros((L, L), dtype=np.float32)
    np.add.at(A, (np.repeat(t, kernel_size), src.reshape(-1)),
              np.float32(1.0 / kernel_size))
    return A


def _decomp_kernel(a_ref, x_ref, res_ref, mean_ref):
    # a_ref: (L, L) moving-average weights (same block every grid step).
    # x_ref / res_ref / mean_ref: (Bb, L, CT) blocks.
    a = a_ref[...]                       # loaded once per grid step
    for b in range(x_ref.shape[0]):      # Bb is small & static (unrolled)
        xv = x_ref[b]                    # (L, CT), native dtype — no upcast
        mean_f32 = jnp.dot(a, xv, preferred_element_type=jnp.float32)   # MXU
        mean = mean_f32.astype(mean_ref.dtype)
        mean_ref[b] = mean
        # Subtract in the output dtype (reuses the already-downcast mean).
        res_ref[b] = (xv - mean.astype(xv.dtype)).astype(res_ref.dtype)


def _vmem_limit_bytes() -> int:
    """Generation-aware scoped-VMEM limit (leave ~25% for compiler scratch)."""
    try:
        cap = int(pltpu.get_tpu_info().vmem_capacity_bytes)
    except Exception:
        cap = 64 * 1024 * 1024          # conservative: v7x per-core VMEM
    return min(cap * 3 // 4, 110 * 1024 * 1024)


def _pick_tile(B: int, L: int, C: int, itemsize: int, budget_bytes: int):
    """Choose (b_tile, c_tile) so blocks are large (HBM-bound op) yet fit VMEM."""
    TARGET = 2 << 20                     # ~2 MiB of x + res + mean per step
    BB_CAP = 16                          # keep the static in-kernel unroll small

    def io_bytes(bb, ct):
        return bb * L * ct * itemsize * 3            # x, res, mean blocks

    def step_bytes(bb, ct):
        tmp = L * ct * 4 * 2                         # in-kernel f32 temporaries
        return 2 * io_bytes(bb, ct) + tmp            # double-buffered pipeline

    if C % 128 == 0:
        ct_opts = [c for c in range(128, C + 1, 128) if C % c == 0]
    else:
        # TODO(synk): ragged/narrow C — present a lane-dense (L, B*C) slab (or
        # pad C to a multiple of 128) so output stores are unmasked vst.
        ct_opts = [C]

    if step_bytes(1, ct_opts[0]) > budget_bytes:
        raise ValueError(
            f"series_decomp: smallest (1, {L}, {ct_opts[0]}) block exceeds the "
            f"VMEM budget ({budget_bytes} B); use the L-tiled banded variant.")

    ct = ct_opts[0]
    for c in ct_opts:
        if step_bytes(1, c) <= budget_bytes and io_bytes(1, c) <= TARGET:
            ct = c

    bb_opts = [d for d in range(1, min(B, BB_CAP) + 1) if B % d == 0]
    bb = 1
    for d in bb_opts:
        if step_bytes(d, ct) <= budget_bytes and io_bytes(d, ct) <= TARGET:
            bb = d

    # Keep >= 2 grid steps whenever possible so both v7x TensorCores get work.
    if (B // bb) * (C // ct) < 2:
        if bb > 1:
            bb = max(d for d in bb_opts if d < bb)
        elif len(ct_opts) > 1 and ct > ct_opts[0]:
            ct = max(c for c in ct_opts if c < ct)
    return bb, ct


def series_decomp(x: jax.Array, kernel_size: int, *,
                  b_tile: int | None = None, c_tile: int | None = None):
    """Pallas implementation of series_decomp.forward.

    Args:
      x: (B, L, C) array (float32 or bfloat16).
      kernel_size: moving-average window (odd, as required for shape match).
    Returns:
      (res, moving_mean), each (B, L, C).
    """
    assert kernel_size % 2 == 1, "series_decomp requires an odd kernel_size"
    B, L, C = x.shape
    itemsize = jnp.dtype(x.dtype).itemsize

    # bf16 inputs get a bf16 A (single-pass MXU); otherwise keep A in f32.
    a_dtype = jnp.bfloat16 if x.dtype == jnp.bfloat16 else jnp.float32
    a = jnp.asarray(_moving_avg_matrix(L, kernel_size), dtype=a_dtype)
    # TODO(synk): for very long sequences (L in the thousands) switch to an
    # L-tiled banded A (block (Lt, Lt + 2*pad)) instead of the dense (L, L).

    # A is grid-invariant: single-buffer it if this jax version supports it.
    try:
        a_spec = pl.BlockSpec((L, L), lambda i, j: (0, 0),
                              pipeline_mode=pl.Buffered(1))
        a_buffers = 1
    except (TypeError, AttributeError):
        a_spec = pl.BlockSpec((L, L), lambda i, j: (0, 0))
        a_buffers = 2

    vmem_limit = _vmem_limit_bytes()
    a_bytes = a_buffers * L * L * jnp.dtype(a_dtype).itemsize
    headroom = 4 << 20                   # compiler-internal scratch / semaphores
    budget = vmem_limit - a_bytes - headroom
    if budget <= 0:
        raise ValueError(
            f"series_decomp: dense ({L},{L}) moving-average matrix does not fit "
            f"the {vmem_limit}-byte VMEM limit; use the L-tiled banded variant.")

    if b_tile is None or c_tile is None:
        bb, ct = _pick_tile(B, L, C, itemsize, budget)
        b_tile = bb if b_tile is None else b_tile
        c_tile = ct if c_tile is None else c_tile
    assert B % b_tile == 0 and C % c_tile == 0, "tiles must divide (B, C)"

    grid = (B // b_tile, C // c_tile)
    block = (b_tile, L, c_tile)
    x_map = lambda i, j: (i, 0, j)

    out_shape = (
        jax.ShapeDtypeStruct((B, L, C), x.dtype),   # res
        jax.ShapeDtypeStruct((B, L, C), x.dtype),   # moving_mean
    )
    grid_spec = pltpu.PrefetchScalarGridSpec(
        num_scalar_prefetch=0,
        grid=grid,
        in_specs=[
            a_spec,                                   # A: fetched once
            pl.BlockSpec(block, x_map),               # x tile
        ],
        out_specs=[
            pl.BlockSpec(block, x_map),               # res tile
            pl.BlockSpec(block, x_map),               # mean tile
        ],
    )

    res, mean = pl.pallas_call(
        _decomp_kernel,
        out_shape=out_shape,
        grid_spec=grid_spec,
        compiler_params=pltpu.CompilerParams(
            dimension_semantics=("parallel", "parallel"),
            vmem_limit_bytes=vmem_limit,
        ),
    )(a, x)
    return res, mean


def _reference(x: jax.Array, kernel_size: int):
    # Pure-JAX reference mirroring the PyTorch module, for a sanity check.
    pad = (kernel_size - 1) // 2
    front = jnp.repeat(x[:, 0:1, :], pad, axis=1)
    end = jnp.repeat(x[:, -1:, :], pad, axis=1)
    xp = jnp.concatenate([front, x, end], axis=1)       # (B, L+2*pad, C)
    L = x.shape[1]
    windows = jnp.stack([xp[:, j:j + L, :] for j in range(kernel_size)], axis=0)
    mean = jnp.mean(windows, axis=0)
    return x - mean, mean


if __name__ == "__main__":
    key = jax.random.PRNGKey(0)

    # Case 1: lane-dense channel tile (C = 128), Autoformer-style window.
    B, L, C, k = 2, 16, 128, 25
    x = jax.random.normal(key, (B, L, C), dtype=jnp.float32)
    res, mean = series_decomp(x, k)
    jax.block_until_ready((res, mean))
    r_ref, m_ref = _reference(x, k)
    assert jnp.allclose(res + mean, x, atol=1e-5, rtol=1e-5)
    assert jnp.allclose(mean, m_ref, atol=1e-2, rtol=1e-2)
    assert jnp.allclose(res, r_ref, atol=1e-2, rtol=1e-2)

    # Case 2: narrow channels (C < 128) with batch folding (b_tile > 1).
    B2, L2, C2, k2 = 4, 8, 32, 5
    x2 = jax.random.normal(jax.random.PRNGKey(1), (B2, L2, C2), dtype=jnp.float32)
    res2, mean2 = series_decomp(x2, k2)
    jax.block_until_ready((res2, mean2))
    r2, m2 = _reference(x2, k2)
    assert jnp.allclose(res2 + mean2, x2, atol=1e-5, rtol=1e-5)
    assert jnp.allclose(mean2, m2, atol=1e-2, rtol=1e-2)
    assert jnp.allclose(res2, r2, atol=1e-2, rtol=1e-2)

    # Case 3: bf16 input — no in-kernel upcast, bf16 A -> single-pass MXU.
    x3 = jax.random.normal(jax.random.PRNGKey(2), (2, 16, 128), dtype=jnp.bfloat16)
    res3, mean3 = series_decomp(x3, 25)
    jax.block_until_ready((res3, mean3))
    r3, m3 = _reference(x3.astype(jnp.float32), 25)
    assert jnp.allclose(res3.astype(jnp.float32) + mean3.astype(jnp.float32),
                        x3.astype(jnp.float32), atol=5e-2, rtol=5e-2)
    assert jnp.allclose(mean3.astype(jnp.float32), m3, atol=1e-1, rtol=1e-1)
    assert jnp.allclose(res3.astype(jnp.float32), r3, atol=1e-1, rtol=1e-1)

    print("KERNEL_OK")
</pallas_src>

<mosaic_0001>
module attributes {stable_mosaic.version = 11 : i64} {
  func.func @_decomp_kernel(%arg0: i32, %arg1: i32, %arg2: memref<16x16xf32, #tpu.memory_space<vmem>>, %arg3: memref<1x16x128xf32, #tpu.memory_space<vmem>>, %arg4: memref<1x16x128xf32, #tpu.memory_space<vmem>>, %arg5: memref<1x16x128xf32, #tpu.memory_space<vmem>>) attributes {dimension_semantics = [#tpu.dimension_semantics<parallel>, #tpu.dimension_semantics<parallel>], iteration_bounds = array<i64: 2, 1>, scalar_prefetch = 0 : i64, scratch_operands = 0 : i64, tpu.core_type = #tpu.core_type<tc>, window_params = [{pipeline_mode = #tpu.pipeline_mode<synchronous>, transform_indices = @transform_0, window_bounds = array<i64: 16, 16>}, {transform_indices = @transform_1, window_bounds = array<i64: 1, 16, 128>}, {transform_indices = @transform_2, window_bounds = array<i64: 1, 16, 128>}, {transform_indices = @transform_3, window_bounds = array<i64: 1, 16, 128>}]} {
    %c0 = arith.constant 0 : index
    %c0_0 = arith.constant 0 : index
    %0 = vector.load %arg2[%c0, %c0_0] : memref<16x16xf32, #tpu.memory_space<vmem>>, vector<16x16xf32>
    %c0_1 = arith.constant 0 : index
    %c0_2 = arith.constant 0 : index
    %c0_3 = arith.constant 0 : index
    %1 = vector.load %arg3[%c0_1, %c0_2, %c0_3] : memref<1x16x128xf32, #tpu.memory_space<vmem>>, vector<1x16x128xf32>
    %2 = vector.shape_cast %1 : vector<1x16x128xf32> to vector<16x128xf32>
    %cst = arith.constant dense<0.000000e+00> : vector<16x128xf32>
    %3 = tpu.matmul %0, %2, %cst {dimension_numbers = #tpu.dot_dimension_numbers<[1], [0], [0], [1], [0, 0, 1, 1], [], []>} : vector<16x16xf32>, vector<16x128xf32>, vector<16x128xf32> -> vector<16x128xf32>
    %c0_4 = arith.constant 0 : index
    %c0_5 = arith.constant 0 : index
    %c0_6 = arith.constant 0 : index
    %4 = vector.load %arg5[%c0_4, %c0_5, %c0_6] : memref<1x16x128xf32, #tpu.memory_space<vmem>>, vector<1x16x128xf32>
    %5 = vector.shape_cast %4 : vector<1x16x128xf32> to vector<16x128xf32>
    %6 = vector.shape_cast %3 : vector<16x128xf32> to vector<1x16x128xf32>
    tpu.vector_store %arg5[%c0_4, %c0_5, %c0_6], %6 {strides = array<i32>} : memref<1x16x128xf32, #tpu.memory_space<vmem>>, vector<1x16x128xf32>,
    %7 = arith.subf %2, %3 : vector<16x128xf32>
    %c0_7 = arith.constant 0 : index
    %c0_8 = arith.constant 0 : index
    %c0_9 = arith.constant 0 : index
    %8 = vector.load %arg4[%c0_7, %c0_8, %c0_9] : memref<1x16x128xf32, #tpu.memory_space<vmem>>, vector<1x16x128xf32>
    %9 = vector.shape_cast %8 : vector<1x16x128xf32> to vector<16x128xf32>
    %10 = vector.shape_cast %7 : vector<16x128xf32> to vector<1x16x128xf32>
    tpu.vector_store %arg4[%c0_7, %c0_8, %c0_9], %10 {strides = array<i32>} : memref<1x16x128xf32, #tpu.memory_space<vmem>>, vector<1x16x128xf32>,
    return
  }
  func.func @transform_0(%arg0: i32, %arg1: i32) -> (i32, i32) {
    %c0_i32 = arith.constant 0 : i32
    %c0_i32_0 = arith.constant 0 : i32
    %c0_i32_1 = arith.constant 0 : i32
    return %c0_i32, %c0_i32_0 : i32, i32
  }
  func.func @transform_1(%arg0: i32, %arg1: i32) -> (i32, i32, i32) {
    %c0_i32 = arith.constant 0 : i32
    %c0_i32_0 = arith.constant 0 : i32
    return %arg0, %c0_i32, %arg1 : i32, i32, i32
  }
  func.func @transform_2(%arg0: i32, %arg1: i32) -> (i32, i32, i32) {
    %c0_i32 = arith.constant 0 : i32
    %c0_i32_0 = arith.constant 0 : i32
    return %arg0, %c0_i32, %arg1 : i32, i32, i32
  }
  func.func @transform_3(%arg0: i32, %arg1: i32) -> (i32, i32, i32) {
    %c0_i32 = arith.constant 0 : i32
    %c0_i32_0 = arith.constant 0 : i32
    return %arg0, %c0_i32, %arg1 : i32, i32, i32
  }
}

</mosaic_0001>

<bundles_post_ra>
// kernel: tpu_custom_call.1
= control target key start
LH: loop header
LB: loop body
LE: loop exit
PB: predicated region body
PF: predicated region fallthrough
CT: control target
= control target key end

     0   :  { %9 = vsyncpa [#allocation3], 0  ;;  %s1037_s0 = inlined_call_operand.hbm [shape: f32[16,16], index: 0, kind: input, shape index: {}]   ;;  %s1038_s1 = inlined_call_operand.hbm [shape: f32[2,16,128], index: 1, kind: input, shape index: {}]   ;;  %s1039_s2 = inlined_call_operand.hbm [shape: f32[2,16,128], index: 2, kind: output, shape index: {0}]   ;;  %s1040_s3 = inlined_call_operand.hbm [shape: f32[2,16,128], index: 3, kind: output, shape index: {1}]  }
   0x1   :  { %10 = vsyncpa [#allocation6], 0 }
   0x2   :  { %12 = vsyncpa [#allocation6 + $0x1], 0 }
   0x3   :  { %13 = vsyncpa [#allocation4], 0 }
   0x4   :  { %15 = vsyncpa [#allocation4 + $0x1], 0 }
   0x5   :  { %16 = vsyncpa [#allocation9], 0 }
   0x6   :  { %18 = vsyncpa [#allocation9 + $0x1], 0  ;;  %s811_s12 = smov 0   ;;  %s813_s13 = smov 0  }
   0x7   :  { %s815_s14 = smov 0   ;;  %s817_s15 = smov 0  }
   0x8   :  { %s819_s16 = smov 0   ;;  %s821_s17 = smov 0  }
   0x9 LB: > { %s494_s18 = sadd.s32 4294967295, %s781_s17   ;;  %s495_s19 = sadd.s32 4294967294, %s781_s17   ;;  %s781_s17 = sphi %s821_s17, %s24_s17   ;;  %s777_s16 = sphi %s819_s16, %s1062_s16   ;;  %s773_s15 = sphi %s817_s15, %s1061_s15   ;;  %s769_s14 = sphi %s815_s14, %s1060_s14   ;;  %s765_s13 = sphi %s813_s13, %s1059_s13   ;;  %s761_s12 = sphi %s811_s12, %s1058_s12  }
   0xa   : > { %p79_p0 = scmp.ne.s32.totalorder %s765_s13, %s761_s12  ;;  %p845_p1 = scmp.eq.s32.totalorder %s494_s18, 0 }
   0xb   : > { %p849_p2 = scmp.eq.s32.totalorder %s494_s18, 1  ;;  %p111_p3 = scmp.eq.s32.totalorder %s495_s19, 1 }
   0xc   : > { %p855_p4 = por %p845_p1, %p79_p0  ;;  %p496_p5 = scmp.ge.s32.totalorder %s781_s17, 1 }
   0xd   : > { %p860_p6 = por %p111_p3, %p79_p0  ;;  %p146_p7 = scmp.lt.s32.totalorder %s781_s17, 3 }
   0xe   : > { %s1046_s22 = scalar_select %p855_p4, 1, 0 }
   0xf   : > { %s1047_s23 = scalar_select %p860_p6, 1, 0 }
  0x10   : > { %p865_p8 = pnand %p496_p5, %p146_p7  ;;  %s783_s25 = smov [#allocation2]  }
  0x11   : > { %s158_s26 = sshll.u32 %s783_s25, 4  ;;  %s36_s28 = sadd.s32 1, %s777_s16  ;;  %s159_s26 = int_to_ptr.vmem [resolvable:$true] %s158_s26 }
  0x12   : > { %p541_p9 = pneg %p865_p8  ;;  %s624_s29 = scalar_lea.vmem %s159_s26, 256 }
  0x13   : > { %p625_p13 = scmp.ne.s32.totalorder %s159_s26, %s624_s29  ;;  %p632_p5 = scmp.lt.s32.totalorder %s159_s26, %s159_s26 }
  0x14   : > { %p874_p11 = pnand %p541_p9, %p845_p1  ;;  %p633_p7 = scmp.lt.s32.totalorder %s624_s29, %s624_s29 }
  0x16   : > { %p615_p12 = pneg %p874_p11  ;;  %p634_p6 = por %p633_p7, %p632_p5 }
  0x18   : > { %p627_p0 = pnand %p625_p13, %p615_p12 }
  0x1a   : > { %p628_p3 = pneg %p627_p0 }
  0x1c   : > { %p635_p4 = pnand %p634_p6, %p628_p3 }
  0x1e   : > { %638 = shalt.err (!%p635_p4)
}
  0x1f   : > { %s1042_s30 = smov 128   ;;  %s1043_s4 = smov 8  }
  0x20   : > { %544 = dma.hbm_to_vmem [thread:$0]  (!%p874_p11), %s1037_s0, 256, %s159_s26, [#allocation3], %s1042_s30, %s1042_s30, %s1043_s4  }
  0x21   : > { %p38_p4 = scmp.ge.s32.totalorder %s36_s28, 2  ;;  %s66_s7 = sadd.s32 1, %s769_s14 }
  0x22   : > { %p73_p6 = scmp.ne.s32.totalorder %s769_s14, %s765_s13  ;;  %p74_p9 = scmp.eq.s32.totalorder %s781_s17, 0 }
  0x23   : > { %s1064_s28 = smov (%p38_p4, %s36_s28), 0  ;;  %p557_p0 = scmp.lt.s32.totalorder %s781_s17, 2 }
  0x24   : > { %p895_p12 = por %p74_p9, %p73_p6  ;;  %p901_p13 = por %p849_p2, %p73_p6 }
  0x25   : > { %s61_s10 = ssub.s32 %s777_s16, %s1064_s28  ;;  %s172_s11 = sand.u32 1, %s769_s14  }
  0x26   : > { %p64_p11 = scmp.eq.s32.totalorder %s61_s10, 0  ;;  %s499_s18 = sshll.u32 %s172_s11, 4 }
  0x27   : > { %s517_s25 = sshll.u32 %s777_s16, 8  ;;  %s176_s5 = scalar_lea.vmem [#allocation5], %s499_s18 }
  0x28   : > { %s910_s19 = scalar_select %p64_p11, %s769_s14, %s66_s7  }
  0x29   : > { %s183_s29 = scalar_lea.hbm %s1038_s1, %s517_s25  ;;  %s184_s6 = sshll.u32 %s176_s5, 4  ;;  %s185_s6 = int_to_ptr.vmem [resolvable:$true] %s184_s6 }
  0x2a   : > { %p918_p2 = pnand %p557_p0, %p895_p12  ;;  %s173_s30 = scalar_lea.sflag [#allocation6], %s172_s11 }
  0x2b   : > { %s652_s10 = scalar_lea.vmem %s185_s6, 256  ;;  %s786_s7 = smov [#allocation5]  }
  0x2c   : > { %p641_p3 = pneg %p918_p2  ;;  %p653_p5 = scmp.ne.s32.totalorder %s185_s6, %s652_s10 }
  0x2d   : > { %s657_s4 = sshll.u32 %s786_s7, 4  ;;  %s658_s4 = int_to_ptr.vmem [resolvable:$false] %s657_s4 }
  0x2e   : > { %p655_p7 = pnand %p653_p5, %p641_p3  ;;  %s659_s25 = scalar_lea.vmem %s658_s4, 512 }
  0x2f   : > { %p660_p6 = scmp.lt.s32.totalorder %s185_s6, %s658_s4  ;;  %p661_p9 = scmp.lt.s32.totalorder %s659_s25, %s652_s10 }
  0x30   : > { %p656_p4 = pneg %p655_p7 }
  0x31   : > { %p662_p11 = por %p661_p9, %p660_p6 }
  0x33   : > { %p663_p10 = pnand %p662_p11, %p656_p4 }
  0x35   : > { %666 = shalt.err (!%p663_p10)
}
  0x36   : > { %s1053_s8 = smov 8   ;;  %s1054_s18 = smov 128  }
  0x37   : > { %548 = dma.hbm_to_vmem [thread:$0]  (!%p918_p2), %s183_s29, 256, %s185_s6, %s173_s30, %s1054_s18, %s1054_s18, %s1053_s8  }
  0x38   : > { %196 = sbr.rel (%p865_p8) target bundleno = 302 (0x12e), region = 28 }
  0x3d   : > { %744 = dma.done.wait (%p845_p1), [#allocation3], 256  }
  0x3e   : > { %746 = vsyncadd (%p845_p1), [#allocation3], 4294967040  ;;  %s936_s4 = sand.u32 1, %s765_s13   ;;  %p1055_p10 = scmp.ne.s32.totalorder %s1046_s22, 0 }
  0x3f   : > { %s504_s11 = sshll.u32 %s936_s4, 4  ;;  %s203_s26 = scalar_lea.sflag [#allocation6], %s936_s4 }
  0x40   : > { %s206_s27 = scalar_lea.vmem [#allocation5], %s504_s11 }
  0x41   : > { %748 = dma.done.wait (%p1055_p10), %s203_s26, 256  }
  0x42   : > { %750 = vsyncadd (%p1055_p10), %s203_s26, 4294967040  ;;  %vm238_vm0 = vcmask 130048   ;;  %v237_v0 = vld [vmem:[%s206_s27 + $0x8] sm:$0xff]  ;;  %v236_v1 = vld [vmem:[%s206_s27] sm:$0xff]  ;;  %s233_s20 = scalar_lea.vmem [#allocation8], %s504_s11  ;;  %s518_s30 = sshll.u32 %s773_s15, 8 }
  0x43   : > { %v234_v2 = vld [vmem:[#allocation2] sm:$0xff]  ;;  %524 = vmatprep.subr.mxu0 %v237_v0  ;;  %v235_v3 = vld [vmem:[#allocation2 + $0x8] sm:$0xff]  ;;  %s363_s24 = sshll.u32 %s233_s20, 4  ;;  %s945_s29 = scalar_lea.vmem [#allocation7], %s504_s11  ;;  %s948_s24 = int_to_ptr.vmem [resolvable:$true] %s363_s24 }
  0x44   : > { %528 = vmatprep.mubr.msk.f32.mxu0 %vm238_vm0, %v234_v2  ;;  %525 = vmatpush3.msra.mxu0 %v237_v0  ;;  %s346_s22 = sshll.u32 %s945_s29, 4  ;;  %s953_s21 = scalar_lea.hbm %s1040_s3, %s518_s30  ;;  %s955_s22 = int_to_ptr.vmem [resolvable:$true] %s346_s22 }
  0x45   : > { %526 = vmatprep.subr.mxu0 %v236_v1  ;;  %s961_s7 = scalar_lea.hbm %s1039_s2, %s518_s30  ;;  %s332_s25 = scalar_lea.sflag [#allocation9], %s936_s4 }
  0x46   : > { %527 = vmatpush3.msra.mxu0 %v236_v1  ;;  %s667_s8 = scalar_lea.vmem %s948_s24, 256  ;;  %s787_s18 = smov [#allocation8]  }
  0x47   : > { %529 = vmatmul.mubr.msk.f32.vlgmr.msra.gmra.mxu0 %vm238_vm0, %v235_v3  ;;  %p668_p1 = scmp.ne.s32.totalorder %s948_s24, %s667_s8  ;;  %s671_s11 = sshll.u32 %s787_s18, 4  ;;  %s672_s11 = int_to_ptr.vmem [resolvable:$false] %s671_s11 }
  0x48   : > { %s673_s26 = scalar_lea.vmem %s672_s11, 512  ;;  %p674_p0 = scmp.lt.s32.totalorder %s948_s24, %s672_s11 }
  0x49   : > { %p669_p8 = pnand %p668_p1, %p901_p13  ;;  %p675_p2 = scmp.lt.s32.totalorder %s673_s26, %s667_s8 }
  0x4b   : > { %p670_p12 = pneg %p669_p8  ;;  %p676_p3 = por %p675_p2, %p674_p0 }
  0x4d   : > { %p677_p5 = pnand %p676_p3, %p670_p12 }
 0x107   : > { %v530_v4 = vpop.f32.mrf.mxu0 }
 0x108   : > { %321 = vst [vmem:[%s233_s20 + $0x8] sm:$0xff] %v530_v4  ;;  %v323_v5 = vsub.f32 %v237_v0, %v530_v4 }
 0x109   : > { %v311_v6 = vpop.f32.mrf.mxu0 }
 0x10a   : > { %325 = vst [vmem:[%s945_s29 + $0x8] sm:$0xff] %v323_v5  ;;  %320 = vst [vmem:[%s233_s20] sm:$0xff] %v311_v6  ;;  %v322_v7 = vsub.f32 %v236_v1, %v311_v6 }
 0x10b   : > { %680 = shalt.err (!%p677_p5)
}
 0x10c   : > { %s681_s27 = scalar_lea.hbm %s953_s21, 256  ;;  %s685_s5 = scalar_lea.hbm %s1040_s3, 512 }
 0x10d   : > { %p682_p7 = scmp.ne.s32.totalorder %s953_s21, %s681_s27  ;;  %p686_p9 = scmp.lt.s32.totalorder %s953_s21, %s1040_s3 }
 0x10e   : > { %p687_p11 = scmp.lt.s32.totalorder %s685_s5, %s681_s27 }
 0x10f   : > { %p683_p4 = pnand %p682_p7, %p901_p13 }
 0x110   : > { %p688_p10 = por %p687_p11, %p686_p9 }
 0x111   : > { %p684_p6 = pneg %p683_p4 }
 0x113   : > { %p689_p1 = pnand %p688_p10, %p684_p6 }
 0x115   : > { %692 = shalt.err (!%p689_p1)
}
 0x116   : > { %s788_s10 = smov 128   ;;  %s789_s8 = smov 8   ;;  %324 = vst [vmem:[%s945_s29] sm:$0xff] %v322_v7 }
 0x117   : > { %538 = dma.vmem_to_hbm [thread:$0]  (%p901_p13), %s948_s24, 256, %s953_s21, %s332_s25, %s788_s10, %s788_s10, %s789_s8  }
 0x118   : > { %s327_s18 = scalar_lea.sflag [#allocation4], %s936_s4  ;;  %s693_s11 = scalar_lea.vmem %s955_s22, 256 }
 0x119   : > { %p694_p8 = scmp.ne.s32.totalorder %s955_s22, %s693_s11  ;;  %s790_s26 = smov [#allocation7]  }
 0x11a   : > { %s697_s27 = sshll.u32 %s790_s26, 4  ;;  %s698_s27 = int_to_ptr.vmem [resolvable:$false] %s697_s27 }
 0x11b   : > { %p695_p12 = pnand %p694_p8, %p901_p13  ;;  %s699_s20 = scalar_lea.vmem %s698_s27, 512 }
 0x11c   : > { %p700_p2 = scmp.lt.s32.totalorder %s955_s22, %s698_s27  ;;  %p701_p3 = scmp.lt.s32.totalorder %s699_s20, %s693_s11 }
 0x11d   : > { %p696_p0 = pneg %p695_p12 }
 0x11e   : > { %p702_p5 = por %p701_p3, %p700_p2 }
 0x120   : > { %p703_p7 = pnand %p702_p5, %p696_p0 }
 0x122   : > { %706 = shalt.err (!%p703_p7)
}
 0x123   : > { %s707_s24 = scalar_lea.hbm %s961_s7, 256  ;;  %s711_s21 = scalar_lea.hbm %s1039_s2, 512 }
 0x124   : > { %p708_p4 = scmp.ne.s32.totalorder %s961_s7, %s707_s24  ;;  %p712_p11 = scmp.lt.s32.totalorder %s961_s7, %s1039_s2 }
 0x125   : > { %p713_p10 = scmp.lt.s32.totalorder %s711_s21, %s707_s24 }
 0x126   : > { %p709_p6 = pnand %p708_p4, %p901_p13 }
 0x127   : > { %p714_p1 = por %p713_p10, %p712_p11 }
 0x128   : > { %p710_p9 = pneg %p709_p6 }
 0x12a   : > { %p715_p8 = pnand %p714_p1, %p710_p9 }
 0x12c   : > { %718 = shalt.err (!%p715_p8)
}
 0x12d   : > { %537 = dma.vmem_to_hbm [thread:$0]  (%p901_p13), %s955_s22, 256, %s961_s7, %s327_s18, %s788_s10, %s788_s10, %s789_s8  }
 0x12e PF: > { %s378_s5 = sand.u32 1, %s761_s12   ;;  %p1056_p12 = scmp.ne.s32.totalorder %s1047_s23, 0 }
 0x12f   : > { %p1057_p0 = scmp.ge.s32.totalorder %s781_s17, 2  ;;  %s379_s6 = scalar_lea.sflag [#allocation4], %s378_s5 }
 0x131   : > { %p550_p2 = pnand %p1057_p0, %p1056_p12 }
 0x133   : > { %p551_p3 = pneg %p550_p2 }
 0x135   : > { %752 = dma.done.wait (%p551_p3), %s379_s6, 256  }
 0x136   : > { %754 = vsyncadd (%p551_p3), %s379_s6, 4294967040  ;;  %s388_s15 = scalar_lea.sflag [#allocation9], %s378_s5 }
 0x137   : > { %756 = dma.done.wait (%p551_p3), %s388_s15, 256  }
 0x138   : > { %758 = vsyncadd (%p551_p3), %s388_s15, 4294967040  ;;  %s24_s17 = sadd.s32 1, %s781_s17   ;;  %s1058_s12 = smov %s765_s13 }
 0x139   : > { %p21_p5 = scmp.ge.s32.totalorder %s24_s17, 4   ;;  %s1059_s13 = smov %s769_s14 }
 0x13a   : > { %s1060_s14 = smov %s910_s19  ;;  %s1061_s15 = smov %s777_s16 }
 0x13b   : > { %s1062_s16 = smov %s1064_s28  ;;  %23 = sbr.rel (!%p21_p5) target bundleno = 9 (0x9), region = 95 }
 0x140   :  { %393 = vsyncpa [#allocation3], 1 }
 0x141   :  { %395 = vsyncpa [#allocation3 + $0x1], 1 }
 0x142   :  { %396 = vsyncpa [#allocation6], 1 }
 0x143   :  { %398 = vsyncpa [#allocation6 + $0x1], 1 }
 0x144   :  { %399 = vsyncpa [#allocation4], 1 }
 0x145   :  { %401 = vsyncpa [#allocation4 + $0x1], 1 }
 0x146   :  { %402 = vsyncpa [#allocation9], 1 }
 0x147   :  { %404 = vsyncpa [#allocation9 + $0x1], 1 }

</bundles_post_ra>
